<compile_context>
chip_gen: v7x
topology: tpu7x:2x2x1
jax: 0.10.0
libtpu: 0.0.40
codegen_flags: <defaults>
</compile_context>

<pallas_src>
import functools

import jax
import jax.numpy as jnp
from jax.experimental import pallas as pl
from jax.experimental.pallas import tpu as pltpu


def _bernoulli_head_kernel(x_ref, w_ref, b_ref, s_ref, logits_ref, ent_ref):
    # x: [br, P*Din] (any float dtype), w: [P*Din, P*Dout] block-diag (bf16),
    # b: [1, P*Dout] f32, s: [P*Dout, P] f32 group-sum selector.
    xv = x_ref[...].astype(w_ref.dtype)                       # in-VMEM cast (VPU)
    logits = jnp.dot(xv, w_ref[...],
                     preferred_element_type=jnp.float32) + b_ref[...]   # [br, P*Dout] f32

    # Elementwise Bernoulli entropy, f32, one softplus:
    #   sigmoid(l) = exp(l - softplus(l))   (exponent <= 0, stable)
    #   ent        = softplus(l) - l * sigmoid(l)
    sp = jax.nn.softplus(logits)
    ent_elem = sp - logits * jnp.exp(logits - sp)

    logits_ref[...] = logits.astype(logits_ref.dtype)
    # Per-original-row entropy via a tiny group-sum matmul (lanes -> P groups).
    ent_ref[...] = jnp.dot(ent_elem, s_ref[...],
                           preferred_element_type=jnp.float32).astype(ent_ref.dtype)


@functools.partial(jax.jit, static_argnames=("block_b",))
def bernoulli_head(x, w_packed, bias_packed, seg_sum, *, block_b=2048):
    """x: [B, Din]; w_packed: [P*Din, P*Dout] block-diagonal; bias_packed: [1, P*Dout];
    seg_sum: [P*Dout, P].  Returns (logits [B, Dout] f32, entropy [B] f32)."""
    B, Din = x.shape
    PK, PN = w_packed.shape
    P = PK // Din
    assert PK == P * Din and B % P == 0, "batch must be divisible by packing factor"
    Dout = PN // P
    n_rows = B // P

    # Contiguous row-major merge of P batch rows per packed row: free (bitcast).
    xp = x.reshape(n_rows, PK)

    # Tile picker (packed rows). block_b is in ORIGINAL batch rows.
    block_rows = max(8, block_b // P)
    if n_rows > block_rows:
        br = block_rows                                   # multiple of 8
    elif B >= 1024:
        # Large batch that fits one tile: split into 2 parallel steps so both
        # v7x TensorCores get work (negligible extra step cost on v5e/v6e).
        br = min(n_rows, ((n_rows + 1) // 2 + 7) // 8 * 8)
    else:
        br = n_rows                                       # single full tile
    grid = (pl.cdiv(n_rows, br),)                         # ragged tail handled by Pallas

    logits_p, ent_p = pl.pallas_call(
        _bernoulli_head_kernel,
        out_shape=(
            jax.ShapeDtypeStruct((n_rows, PN), jnp.float32),   # packed logits (lane-dense)
            jax.ShapeDtypeStruct((n_rows, P), jnp.float32),    # packed per-row entropy
        ),
        grid=grid,
        in_specs=[
            pl.BlockSpec((br, PK), lambda i: (i, 0)),          # x tile
            pl.BlockSpec((PK, PN), lambda i: (0, 0)),          # resident packed weight
            pl.BlockSpec((1, PN), lambda i: (0, 0)),           # bias
            pl.BlockSpec((PN, P), lambda i: (0, 0)),           # group-sum selector
        ],
        out_specs=(
            pl.BlockSpec((br, PN), lambda i: (i, 0)),
            pl.BlockSpec((br, P), lambda i: (i, 0)),
        ),
        compiler_params=pltpu.CompilerParams(
            dimension_semantics=("parallel",)),
    )(xp, w_packed, bias_packed, seg_sum)

    # Unpack: contiguous reshapes, free.
    return logits_p.reshape(B, Dout), ent_p.reshape(B)


class FixedBernoulliJax:
    """Mirror of FixedBernoulli: logits from the kernel, entropy() fused in-kernel;
    probs / mode derived lazily from logits (not the hot path)."""

    # TODO(synk): dist.sample() (inherited from torch.distributions.Bernoulli) is not
    # implemented; it is not part of the module's forward pass.

    def __init__(self, logits, entropy):
        self.logits = logits
        self._entropy = entropy
        self._probs = None

    @property
    def probs(self):
        if self._probs is None:
            self._probs = jax.nn.sigmoid(self.logits)
        return self._probs

    def mode(self):
        # (probs > 0.5).float()  ==  (logits > 0).float()
        return (self.logits > 0).astype(jnp.float32)

    def entropy(self):
        return self._entropy

    def log_probs(self, actions):
        # Plain-JAX glue (not the hot path): sum of Bernoulli log_prob, [B, 1].
        l = self.logits
        lp = actions * (-jax.nn.softplus(-l)) + (1.0 - actions) * (-jax.nn.softplus(l))
        return jnp.sum(lp.reshape(actions.shape[0], -1), axis=-1, keepdims=True)


class BernoulliPallas:
    """JAX/Pallas equivalent of the PyTorch `Bernoulli` module."""

    def __init__(self, num_inputs, num_outputs, key, compute_dtype=jnp.bfloat16):
        # nn.init.orthogonal_ on weight [num_outputs, num_inputs], bias = 0.
        self.weight = jax.nn.initializers.orthogonal(scale=1.0)(
            key, (num_outputs, num_inputs), jnp.float32)
        self.bias = jnp.zeros((num_outputs,), jnp.float32)
        self.num_inputs, self.num_outputs = num_inputs, num_outputs

        # One-time packing (hoisted out of the per-call path).
        wt = jnp.asarray(self.weight.T, dtype=compute_dtype)       # [Din, Dout]
        self._params = {1: self._pack(wt, self.bias, 1)}
        # Only pre-pack P=8 when it actually widens a narrow lane dim and the
        # 8x-larger block-diag weight stays small.
        if num_outputs < 128 and num_inputs <= 1024:
            self._params[8] = self._pack(wt, self.bias, 8)

    @staticmethod
    def _pack(wt, bias, P):
        Din, Dout = wt.shape
        w_p = jnp.kron(jnp.eye(P, dtype=wt.dtype), wt)             # [P*Din, P*Dout] block-diag
        b_p = jnp.tile(bias.astype(jnp.float32), P).reshape(1, P * Dout)
        seg = (jnp.arange(P * Dout)[:, None] // Dout
               == jnp.arange(P)[None, :]).astype(jnp.float32)       # [P*Dout, P]
        return w_p, b_p, seg

    def __call__(self, x):
        B = x.shape[0]
        P = 8 if (8 in self._params and B % 8 == 0) else 1
        w_p, b_p, seg = self._params[P]
        logits, ent = bernoulli_head(x, w_p, b_p, seg)
        return FixedBernoulliJax(logits, ent)


if __name__ == "__main__":
    key = jax.random.PRNGKey(0)
    k_w, k_x = jax.random.split(key)

    batch, num_inputs, num_outputs = 8, 32, 16
    module = BernoulliPallas(num_inputs, num_outputs, k_w)
    x = jax.random.normal(k_x, (batch, num_inputs), jnp.float32)

    dist = module(x)
    jax.block_until_ready((dist.logits, dist.probs, dist.mode(), dist.entropy()))

    def reference(x, weight, bias):
        # Reference on bf16-rounded inputs (the kernel does the matmul in bf16 on
        # the MXU with f32 accumulation).
        xr = x.astype(jnp.bfloat16).astype(jnp.float32)
        wr = weight.astype(jnp.bfloat16).astype(jnp.float32)
        logits = jnp.dot(xr, wr.T, precision=jax.lax.Precision.HIGHEST) + bias
        probs = jax.nn.sigmoid(logits)
        ent = jnp.sum(probs * jax.nn.softplus(-logits)
                      + (1.0 - probs) * jax.nn.softplus(logits), axis=-1)
        return logits, probs, ent

    ref_logits, ref_probs, ref_ent = reference(x, module.weight, module.bias)
    assert dist.logits.shape == (batch, num_outputs)
    assert dist.entropy().shape == (batch,)
    assert jnp.allclose(dist.logits, ref_logits, atol=2e-3)
    assert jnp.allclose(dist.probs, ref_probs, atol=1e-3)
    assert jnp.allclose(dist.entropy(), ref_ent, rtol=1e-2, atol=1e-2)
    mode_ok = (dist.mode() == (ref_probs > 0.5).astype(jnp.float32)) \
        | (jnp.abs(ref_logits) < 1e-2)
    assert bool(jnp.all(mode_ok))

    # Larger batch: exercises the packed (P=8) path, grid of 2 parallel steps and a
    # ragged last block (1224 rows -> 153 packed rows -> blocks of 80 + 73).
    xb = jax.random.normal(jax.random.fold_in(key, 1), (1224, num_inputs), jnp.float32)
    distb = module(xb)
    jax.block_until_ready((distb.logits, distb.entropy()))
    refb_logits, _, refb_ent = reference(xb, module.weight, module.bias)
    assert jnp.allclose(distb.logits, refb_logits, atol=2e-3)
    assert jnp.allclose(distb.entropy(), refb_ent, rtol=1e-2, atol=1e-2)

    # Odd batch (not a multiple of 8): exercises the unpacked (P=1) fallback path.
    xc = jax.random.normal(jax.random.fold_in(key, 2), (13, num_inputs), jnp.float32)
    distc = module(xc)
    jax.block_until_ready((distc.logits, distc.entropy()))
    refc_logits, _, refc_ent = reference(xc, module.weight, module.bias)
    assert jnp.allclose(distc.logits, refc_logits, atol=2e-3)
    assert jnp.allclose(distc.entropy(), refc_ent, rtol=1e-2, atol=1e-2)

    print("KERNEL_OK")
</pallas_src>

<mosaic_0001>
module attributes {stable_mosaic.version = 11 : i64} {
  func.func @_bernoulli_head_kernel(%arg0: i32, %arg1: memref<1x256xf32, #tpu.memory_space<vmem>>, %arg2: memref<256x128xbf16, #tpu.memory_space<vmem>>, %arg3: memref<1x128xf32, #tpu.memory_space<vmem>>, %arg4: memref<128x8xf32, #tpu.memory_space<vmem>>, %arg5: memref<1x128xf32, #tpu.memory_space<vmem>>, %arg6: memref<1x8xf32, #tpu.memory_space<vmem>>) attributes {dimension_semantics = [#tpu.dimension_semantics<parallel>], iteration_bounds = array<i64: 1>, scalar_prefetch = 0 : i64, scratch_operands = 0 : i64, tpu.core_type = #tpu.core_type<tc>, window_params = [{transform_indices = @transform_0, window_bounds = array<i64: 1, 256>}, {pipeline_mode = #tpu.pipeline_mode<synchronous>, transform_indices = @transform_1, window_bounds = array<i64: 256, 128>}, {pipeline_mode = #tpu.pipeline_mode<synchronous>, transform_indices = @transform_2, window_bounds = array<i64: 1, 128>}, {pipeline_mode = #tpu.pipeline_mode<synchronous>, transform_indices = @transform_3, window_bounds = array<i64: 128, 8>}, {transform_indices = @transform_4, window_bounds = array<i64: 1, 128>}, {transform_indices = @transform_5, window_bounds = array<i64: 1, 8>}]} {
    %c0 = arith.constant 0 : index
    %c0_0 = arith.constant 0 : index
    %0 = vector.load %arg1[%c0, %c0_0] : memref<1x256xf32, #tpu.memory_space<vmem>>, vector<1x256xf32>
    %1 = arith.truncf %0 : vector<1x256xf32> to vector<1x256xbf16>
    %c0_1 = arith.constant 0 : index
    %c0_2 = arith.constant 0 : index
    %2 = vector.load %arg2[%c0_1, %c0_2] : memref<256x128xbf16, #tpu.memory_space<vmem>>, vector<256x128xbf16>
    %cst = arith.constant dense<0.000000e+00> : vector<1x128xf32>
    %3 = tpu.matmul %1, %2, %cst {dimension_numbers = #tpu.dot_dimension_numbers<[1], [0], [0], [1], [0, 0, 1, 1], [], []>} : vector<1x256xbf16>, vector<256x128xbf16>, vector<1x128xf32> -> vector<1x128xf32>
    %c0_3 = arith.constant 0 : index
    %c0_4 = arith.constant 0 : index
    %4 = vector.load %arg3[%c0_3, %c0_4] : memref<1x128xf32, #tpu.memory_space<vmem>>, vector<1x128xf32>
    %5 = arith.addf %3, %4 : vector<1x128xf32>
    %cst_5 = arith.constant 0.000000e+00 : f32
    %6 = vector.broadcast %cst_5 : f32 to vector<1x128xf32>
    %7 = arith.maximumf %5, %6 : vector<1x128xf32>
    %8 = vector.broadcast %cst_5 : f32 to vector<1x128xf32>
    %9 = arith.subf %5, %8 : vector<1x128xf32>
    %10 = arith.cmpf one, %9, %9 : vector<1x128xf32>
    %11 = vector.broadcast %cst_5 : f32 to vector<1x128xf32>
    %12 = arith.addf %5, %11 : vector<1x128xf32>
    %13 = math.absf %9 : vector<1x128xf32>
    %cst_6 = arith.constant 0.000000e+00 : f32
    %14 = vector.broadcast %cst_6 : f32 to vector<1x128xf32>
    %15 = arith.subf %14, %13 : vector<1x128xf32>
    %16 = math.exp %15 : vector<1x128xf32>
    %17 = math.log1p %16 : vector<1x128xf32>
    %18 = arith.addf %7, %17 : vector<1x128xf32>
    %19 = arith.select %10, %12, %18 : vector<1x128xi1>, vector<1x128xf32>
    %20 = arith.subf %5, %19 : vector<1x128xf32>
    %21 = math.exp %20 : vector<1x128xf32>
    %22 = arith.mulf %5, %21 : vector<1x128xf32>
    %23 = arith.subf %19, %22 : vector<1x128xf32>
    %c0_7 = arith.constant 0 : index
    %c0_8 = arith.constant 0 : index
    %24 = vector.load %arg5[%c0_7, %c0_8] : memref<1x128xf32, #tpu.memory_space<vmem>>, vector<1x128xf32>
    tpu.vector_store %arg5[%c0_7, %c0_8], %5 {strides = array<i32>} : memref<1x128xf32, #tpu.memory_space<vmem>>, vector<1x128xf32>,
    %c0_9 = arith.constant 0 : index
    %c0_10 = arith.constant 0 : index
    %25 = vector.load %arg4[%c0_9, %c0_10] : memref<128x8xf32, #tpu.memory_space<vmem>>, vector<128x8xf32>
    %cst_11 = arith.constant dense<0.000000e+00> : vector<1x8xf32>
    %26 = tpu.matmul %23, %25, %cst_11 {dimension_numbers = #tpu.dot_dimension_numbers<[1], [0], [0], [1], [0, 0, 1, 1], [], []>} : vector<1x128xf32>, vector<128x8xf32>, vector<1x8xf32> -> vector<1x8xf32>
    %c0_12 = arith.constant 0 : index
    %c0_13 = arith.constant 0 : index
    %27 = vector.load %arg6[%c0_12, %c0_13] : memref<1x8xf32, #tpu.memory_space<vmem>>, vector<1x8xf32>
    tpu.vector_store %arg6[%c0_12, %c0_13], %26 {strides = array<i32>} : memref<1x8xf32, #tpu.memory_space<vmem>>, vector<1x8xf32>,
    return
  }
  func.func @transform_0(%arg0: i32) -> (i32, i32) {
    %c0_i32 = arith.constant 0 : i32
    %c0_i32_0 = arith.constant 0 : i32
    return %arg0, %c0_i32 : i32, i32
  }
  func.func @transform_1(%arg0: i32) -> (i32, i32) {
    %c0_i32 = arith.constant 0 : i32
    %c0_i32_0 = arith.constant 0 : i32
    %c0_i32_1 = arith.constant 0 : i32
    return %c0_i32, %c0_i32_0 : i32, i32
  }
  func.func @transform_2(%arg0: i32) -> (i32, i32) {
    %c0_i32 = arith.constant 0 : i32
    %c0_i32_0 = arith.constant 0 : i32
    %c0_i32_1 = arith.constant 0 : i32
    return %c0_i32, %c0_i32_0 : i32, i32
  }
  func.func @transform_3(%arg0: i32) -> (i32, i32) {
    %c0_i32 = arith.constant 0 : i32
    %c0_i32_0 = arith.constant 0 : i32
    %c0_i32_1 = arith.constant 0 : i32
    return %c0_i32, %c0_i32_0 : i32, i32
  }
  func.func @transform_4(%arg0: i32) -> (i32, i32) {
    %c0_i32 = arith.constant 0 : i32
    %c0_i32_0 = arith.constant 0 : i32
    return %arg0, %c0_i32 : i32, i32
  }
  func.func @transform_5(%arg0: i32) -> (i32, i32) {
    %c0_i32 = arith.constant 0 : i32
    %c0_i32_0 = arith.constant 0 : i32
    return %arg0, %c0_i32 : i32, i32
  }
}

</mosaic_0001>

<bundles_post_ra>
// kernel: bernoulli_head.1
= control target key start
LH: loop header
LB: loop body
LE: loop exit
PB: predicated region body
PF: predicated region fallthrough
CT: control target
= control target key end

     0   :  { %v23_v5 = vlaneseq  ;;  %s649_s0 = inlined_call_operand.vmem [shape: f32[1,256], index: 0, kind: input, shape index: {}]   ;;  %s650_s1 = inlined_call_operand.vmem [shape: bf16[256,128], index: 1, kind: input, shape index: {}]   ;;  %s651_s2 = inlined_call_operand.vmem [shape: f32[1,128], index: 2, kind: input, shape index: {}]   ;;  %s652_s3 = inlined_call_operand.vmem [shape: f32[128,8], index: 3, kind: input, shape index: {}]   ;;  %s653_s4 = inlined_call_operand.vmem [shape: f32[1,128], index: 4, kind: output, shape index: {0}]   ;;  %s654_s5 = inlined_call_operand.hbm [shape: f32[1,8], index: 5, kind: output, shape index: {1}]  }
   0x1   :  { %v452_v0 = vld [vmem:[%s650_s1 + $0x40] sm:$0xff]   ;;  %v454_v2 = vld [vmem:[%s650_s1 + $0x48] sm:$0xff]   ;;  %v456_v4 = vld [vmem:[%s650_s1 + $0x50] sm:$0xff]  }
   0x2   :  { %v453_v1 = vld [vmem:[%s650_s1] sm:$0xff]   ;;  %350 = vmatprep.subr.bf16.mxu0 %v452_v0  ;;  %v455_v3 = vld [vmem:[%s650_s1 + $0x8] sm:$0xff]   ;;  %v457_v6 = vld [vmem:[%s650_s1 + $0x10] sm:$0xff]   ;;  %v24_v8 = vshrl.u32 %v23_v5, 7 }
   0x3   :  { %351 = vmatpush3.bf16.msra.mxu0 %v453_v1  ;;  %v458_v7 = vld [vmem:[%s650_s1 + $0x58] sm:$0xff]   ;;  %v460_v10 = vld [vmem:[%s650_s1 + $0x60] sm:$0xff]   ;;  %v462_v13 = vld [vmem:[%s650_s1 + $0x68] sm:$0xff]  }
   0x4   :  { %352 = vmatprep.subr.bf16.mxu0 %v454_v2  ;;  %v459_v9 = vld [vmem:[%s650_s1 + $0x18] sm:$0xff]   ;;  %v29_v11 = vsub.s32 1, %v24_v8  ;;  %v461_v12 = vld [vmem:[%s650_s1 + $0x20] sm:$0xff]  }
   0x5   :  { %v21_v14 = vld [vmem:[%s649_s0] sm:$0x3] }
   0x7   :  { %353 = vmatpush3.bf16.msra.mxu0 %v455_v3 }
   0x8   :  { %354 = vmatprep.subr.bf16.mxu0 %v456_v4 }
   0xb   :  { %355 = vmatpush3.bf16.msra.mxu0 %v457_v6 }
   0xc   :  { %356 = vmatprep.subr.bf16.mxu0 %v458_v7 }
   0xf   :  { %357 = vmatpush3.bf16.msra.mxu0 %v459_v9 }
  0x10   :  { %358 = vmatprep.subr.bf16.mxu0 %v460_v10 }
  0x11   :  { %11 = vsyncpa [#allocation3], 0  ;;  %v30_v15 = vrot.slane %v21_v14, %v29_v11  ;;  %v463_v16 = vld [vmem:[%s650_s1 + $0x28] sm:$0xff]   ;;  %v464_v18 = vld [vmem:[%s650_s1 + $0x70] sm:$0xff]   ;;  %v25_v19 = vsub.s32 0, %v24_v8  ;;  %v498_v28 = vmov 0.0|0.0  }
  0x12   :  { %v465_v20 = vld [vmem:[%s650_s1 + $0x30] sm:$0xff]   ;;  %v466_v21 = vld [vmem:[%s650_s1 + $0x78] sm:$0xff]   ;;  %v228_v25 = vld [vmem:[%s652_s3] sm:$0xff]  ;;  %424 = vmatprep.subr.bf16.mxu1 %v498_v28  ;;  %vm499_vm0 = vmmov 0   ;;  %v500_v31 = vmov 0.0   ;;  %vm314_vm3 = vcmask 57344  }
  0x13   :  { %359 = vmatpush3.bf16.msra.mxu0 %v461_v12  ;;  %v34_v17 = vpack.c.bf16 %v30_v15, %v30_v15  ;;  %v26_v22 = vrot.slane %v21_v14, %v25_v19  ;;  %v467_v23 = vld [vmem:[%s650_s1 + $0x38] sm:$0xff]   ;;  %v229_v26 = vld [vmem:[%s652_s3 + $0x8] sm:$0xff]  ;;  %v230_v27 = vld [vmem:[%s652_s3 + $0x10] sm:$0xff]  ;;  %421 = vmatprep.mubr.msk.f32.mxu1 %vm499_vm0, %v500_v31 }
  0x14   :  { %360 = vmatprep.subr.bf16.mxu0 %v462_v13  ;;  %v425_v29 = vpack.c.bf16 %v229_v26, %v228_v25  ;;  %v231_v30 = vld [vmem:[%s652_s3 + $0x18] sm:$0xff]  ;;  %v232_v33 = vld [vmem:[%s652_s3 + $0x20] sm:$0xff]  ;;  %v233_v34 = vld [vmem:[%s652_s3 + $0x28] sm:$0xff] }
  0x15   :  { %196 = vmatprep.mubr.bf16.mxu0 %v34_v17  ;;  %v33_v24 = vpack.c.bf16 %v26_v22, %v26_v22  ;;  %v428_v32 = vpack.c.bf16 %v231_v30, %v230_v27  ;;  %v431_v35 = vpack.c.bf16 %v233_v34, %v232_v33  ;;  %v234_v36 = vld [vmem:[%s652_s3 + $0x30] sm:$0xff]  ;;  %v235_v37 = vld [vmem:[%s652_s3 + $0x38] sm:$0xff]  ;;  %v236_v39 = vld [vmem:[%s652_s3 + $0x40] sm:$0xff] }
  0x16   :  { %426 = vmatpush3.bf16.msra.mxu1 %v425_v29  ;;  %v434_v38 = vpack.c.bf16 %v235_v37, %v234_v36  ;;  %v237_v40 = vld [vmem:[%s652_s3 + $0x48] sm:$0xff]  ;;  %v238_v42 = vld [vmem:[%s652_s3 + $0x50] sm:$0xff]  ;;  %v239_v43 = vld [vmem:[%s652_s3 + $0x58] sm:$0xff] }
  0x17   :  { %361 = vmatpush3.bf16.msra.mxu0 %v463_v16  ;;  %427 = vmatprep.subr.bf16.mxu1 %v498_v28  ;;  %v437_v41 = vpack.c.bf16 %v237_v40, %v236_v39  ;;  %v440_v44 = vpack.c.bf16 %v239_v43, %v238_v42  ;;  %v240_v45 = vld [vmem:[%s652_s3 + $0x60] sm:$0xff]  ;;  %v241_v46 = vld [vmem:[%s652_s3 + $0x68] sm:$0xff]  ;;  %v242_v48 = vld [vmem:[%s652_s3 + $0x70] sm:$0xff] }
  0x18   :  { %362 = vmatprep.subr.bf16.mxu0 %v464_v18  ;;  %v443_v47 = vpack.c.bf16 %v241_v46, %v240_v45  ;;  %v243_v49 = vld [vmem:[%s652_s3 + $0x78] sm:$0xff]  ;;  %v67_v52 = vld [vmem:[%s651_s2] sm:$0x1]  ;;  %s501_s2 = smov [#allocation2]  }
  0x19   :  { %v446_v50 = vpack.c.bf16 %v243_v49, %v242_v48  ;;  %s324_s3 = sshll.u32 %s501_s2, 4  ;;  %s325_s3 = int_to_ptr.vmem [resolvable:$true] %s324_s3 }
  0x1a   :  { %429 = vmatpush3.bf16.msra.mxu1 %v428_v32  ;;  %s478_s9 = scalar_lea.vmem %s325_s3, 32  ;;  %p479_p1 = scmp.lt.s32.totalorder %s325_s3, %s325_s3 }
  0x1b   :  { %363 = vmatpush3.bf16.msra.mxu0 %v465_v20  ;;  %430 = vmatprep.subr.bf16.mxu1 %v498_v28 }
  0x1c   :  { %364 = vmatprep.subr.bf16.mxu0 %v466_v21 }
  0x1e   :  { %432 = vmatpush3.bf16.msra.mxu1 %v431_v35 }
  0x1f   :  { %365 = vmatpush3.bf16.msra.mxu0 %v467_v23  ;;  %433 = vmatprep.subr.bf16.mxu1 %v498_v28 }
  0x22   :  { %197 = vmatmul.mubr.bf16.vlgmr.msra.gmra.mrb[0].mxu0 %v33_v24  ;;  %435 = vmatpush3.bf16.msra.mxu1 %v434_v38 }
  0x23   :  { %436 = vmatprep.subr.bf16.mxu1 %v498_v28 }
  0x26   :  { %438 = vmatpush3.bf16.msra.mxu1 %v437_v41 }
  0x27   :  { %439 = vmatprep.subr.bf16.mxu1 %v498_v28 }
  0x2a   :  { %441 = vmatpush3.bf16.msra.mxu1 %v440_v44 }
  0x2b   :  { %442 = vmatprep.subr.bf16.mxu1 %v498_v28 }
  0x2e   :  { %444 = vmatpush3.bf16.msra.mxu1 %v443_v47 }
  0x2f   :  { %445 = vmatprep.subr.bf16.mxu1 %v498_v28 }
  0x32   :  { %447 = vmatpush3.bf16.msra.mxu1 %v446_v50 }
  0xf5   :  { %v366_v51 = vpop.f32.mrb[0].mxu0 }
  0xf6   :  { %v367_v53 = vpop.f32.mrb[1].mxu0 }
  0xf7   :  { %v368_v54 = vadd.f32 %v367_v53, %v366_v51  ;;  %v369_v55 = vpop.f32.mrb[2].mxu0 }
  0xf8   :  { %v370_v56 = vpop.f32.mrb[3].mxu0 }
  0xf9   :  { %v199_v57 = vadd.f32 %v368_v54, %v67_v52 }
  0xfb   :  { %v207_v58 = vand.u32 2147483647, %v199_v57  ;;  %227 = vst [vmem:[%s653_s4] sm:$0x1] %v199_v57  ;;  %v204_v5 = vmax.f32 %v199_v57, 0.0  ;;  %vm205_vm2 = vcmp.ne.f32.partialorder %v199_v57, %v199_v57  ;;  %s474_s4 = scalar_lea.vmem %s325_s3, 16 }
  0xfc   :  { %p475_p0 = scmp.ne.s32.totalorder %s325_s3, %s474_s4  ;;  %p480_p2 = scmp.lt.s32.totalorder %s478_s9, %s474_s4 }
  0xfd   :  { %v208_v59 = vsub.f32 0.0, %v207_v58 }
  0xfe   :  { %p481_p3 = por %p480_p2, %p479_p1 }
  0xff   :  { %v209_v60 = vmul.f32 1.442695, %v208_v59 }
 0x100   :  { %p482_p4 = pnand %p481_p3, %p475_p0 }
 0x101   :  { %468 = vpow2.f32 %v209_v60 }
 0x10b   :  { %v469_v61 = vpop.eup %468 }
 0x10c   :  { %v211_v62 = vadd.f32 1.0, %v469_v61  ;;  %v214_v63 = vmul.f32 -0.5, %v469_v61  ;;  %v217_v1 = vand.u32 2147483647, %v469_v61 }
 0x10e   :  { %470 = vlog2.f32 %v211_v62  ;;  %v215_v0 = vadd.f32 1.0, %v214_v63  ;;  %vm218_vm1 = vcmp.lt.f32.partialorder %v217_v1, 0.0004427343 }
 0x110   :  { %v216_v4 = vmul.f32 %v469_v61, %v215_v0 }
 0x118   :  { %v471_v2 = vpop.eup %470 }
 0x119   :  { %v213_v3 = vmul.f32 0.6931472, %v471_v2 }
 0x11b   :  { %v219_v6 = vsel %vm218_vm1, %v216_v4, %v213_v3 }
 0x11c   :  { %v220_v7 = vadd.f32 %v219_v6, %v204_v5 }
 0x11e   :  { %v221_v8 = vsel %vm205_vm2, %v199_v57, %v220_v7 }
 0x11f   :  { %v222_v9 = vsub.f32 %v199_v57, %v221_v8 }
 0x121   :  { %v223_v10 = vmul.f32 1.442695, %v222_v9 }
 0x123   :  { %472 = vpow2.f32 %v223_v10 }
 0x12d   :  { %v473_v11 = vpop.eup %472 }
 0x12e   :  { %v225_v12 = vmul.f32 %v473_v11, %v199_v57 }
 0x130   :  { %v226_v13 = vsub.f32 %v221_v8, %v225_v12 }
 0x132   :  { %422 = vmatmul.mubr.f32.vlgmr.msra.gmra.mrb[0].mxu1 %v226_v13 }
 0x205   :  { %v310_v14 = vpop.f32.mrb[0].mxu1 }
 0x206   :  { %315 = vst.msk [vmem:[#allocation2] sm:$0x1] %vm314_vm3, %v310_v14  ;;  %v423_v15 = vpop.f32.mrb[1].mxu1 }
 0x207   :  { %485 = shalt.err (!%p482_p4)
}
 0x208   :  { %s486_s12 = scalar_lea.hbm %s654_s5, 16 }
 0x209   :  { %p487_p5 = scmp.ne.s32.totalorder %s654_s5, %s486_s12  ;;  %p490_p6 = scmp.lt.u32.totalorder %s486_s12, %s654_s5 }
 0x20b   :  { %p492_p7 = pnand %p490_p6, %p487_p5 }
 0x20d   :  { %495 = shalt.err (!%p492_p7)
}
 0x20e   :  { %327 = dma.vmem_to_hbm [thread:$0]  %s325_s3, 16, %s654_s5, [#allocation3]  }
 0x20f   :  { %496 = dma.done.wait [#allocation3], 16  }
 0x210   :  { %497 = vsyncadd [#allocation3], 4294967280 }
 0x211   :  { %333 = vsyncpa [#allocation3], 1 }

</bundles_post_ra>
